<compile_context>
chip_gen: v6e
topology: v6e:2x2x1
jax: 0.10.0
libtpu: 0.0.40
codegen_flags: <defaults>
</compile_context>

<pallas_src>
import jax
import jax.numpy as jnp
from jax.experimental import pallas as pl
from jax.experimental.pallas import tpu as pltpu

BIT_WIDTH = 4
GROUP_SIZE = 128
NEG_CLIP = float(-(2 ** (BIT_WIDTH - 1)))          # -8
POS_CLIP = float(2 ** (BIT_WIDTH - 1) - 1)         #  7
QLEVELS = float(2 ** BIT_WIDTH - 1)                # 15
STEP_EPS = 1e-12                                   # guard for constant groups


def lsq_kernel(x_ref, o_ref):
    x = x_ref[...]                                  # (GB, GROUP_SIZE), lane-dense

    # --- first-forward initialization: per-group step from min/max (XLU reduce) ---
    x_min = jnp.min(x, axis=-1, keepdims=True)      # (GB, 1)
    x_max = jnp.max(x, axis=-1, keepdims=True)      # (GB, 1)
    step = (x_max - x_min) / QLEVELS                # (GB, 1); per-group only

    # One reciprocal per *group* (EUP slot, GB values) and a broadcast multiply
    # per element on the VALU, instead of a per-element fp32 divide.
    inv_step = pl.reciprocal(jnp.maximum(step, STEP_EPS), approx=False)

    # --- LSQ fake quantization (forward path of LSQAutograd); offset == 0 ---
    x_scaled = x * inv_step
    x_rounded = jnp.round(jnp.clip(x_scaled, NEG_CLIP, POS_CLIP))
    o_ref[...] = x_rounded * step


def _pick_group_block(g, max_block=1024):
    """Single block if it fits, else the biggest multiple-of-8 divisor <= max_block."""
    if g <= max_block:
        return g
    for blk in range(max_block - max_block % 8, 7, -8):
        if g % blk == 0:
            return blk
    return g                                        # fall back: one big block


def quantizer_lsq_forward(x):
    """Forward of QuantizerLSQ(group_size=128, bit_width=4, use_offset=True) on
    its first call (step derived from x; offset == 0 so it cancels exactly)."""
    # TODO(synk): the already-initialized path (trained step/offset parameters)
    # would take (num_groups, 1) step/offset inputs instead of deriving them.
    x_shape = x.shape
    assert x.size % GROUP_SIZE == 0, "x.size must be a multiple of group_size"
    xg = x.reshape(-1, GROUP_SIZE)                  # regroup: (-1, group_size)
    g = xg.shape[0]
    group_block = _pick_group_block(g)

    out = pl.pallas_call(
        lsq_kernel,
        out_shape=jax.ShapeDtypeStruct((g, GROUP_SIZE), x.dtype),
        grid_spec=pltpu.PrefetchScalarGridSpec(
            num_scalar_prefetch=0,
            grid=(g // group_block,),
            in_specs=[pl.BlockSpec((group_block, GROUP_SIZE), lambda i: (i, 0))],
            out_specs=pl.BlockSpec((group_block, GROUP_SIZE), lambda i: (i, 0)),
        ),
        compiler_params=pltpu.CompilerParams(
            dimension_semantics=("parallel",),
        ),
    )(xg)
    return out.reshape(x_shape)


def _reference(x):
    """Pure-JAX reference mirroring the PyTorch module's first forward."""
    xg = x.reshape(-1, GROUP_SIZE)
    x_min = jnp.min(xg, axis=-1, keepdims=True)
    x_max = jnp.max(xg, axis=-1, keepdims=True)
    step = (x_max - x_min) / QLEVELS
    xs = xg / step
    xr = jnp.round(jnp.clip(xs, NEG_CLIP, POS_CLIP))
    return (xr * step).reshape(x.shape), step


if __name__ == "__main__":
    key = jax.random.PRNGKey(0)
    # Small NCHW activation: 2*4*16*16 = 2048 elements -> 16 groups of 128.
    x = jax.random.normal(key, (2, 4, 16, 16), dtype=jnp.float32)

    out = jax.block_until_ready(quantizer_lsq_forward(x))

    ref, step_ref = _reference(x)
    assert out.shape == x.shape and out.dtype == x.dtype

    num_groups = x.size // GROUP_SIZE
    lsb = jnp.broadcast_to(step_ref, (num_groups, GROUP_SIZE)).reshape(x.shape)
    lsb_err = jnp.abs(out - ref) / jnp.maximum(lsb, 1e-30)
    # Reciprocal-multiply vs divide can only disagree at exact round-half ties,
    # and then by exactly one quantization step; otherwise results are bit-exact.
    assert float(jnp.max(lsb_err)) <= 1.0 + 1e-4, "error exceeds 1 LSB vs reference"
    assert float(jnp.mean(lsb_err > 1e-4)) < 1e-2, "too many mismatches vs reference"

    print("KERNEL_OK")
</pallas_src>

<mosaic_0001>
module attributes {stable_mosaic.version = 11 : i64} {
  func.func @lsq_kernel(%arg0: i32, %arg1: memref<16x128xf32, #tpu.memory_space<vmem>>, %arg2: memref<16x128xf32, #tpu.memory_space<vmem>>) attributes {dimension_semantics = [#tpu.dimension_semantics<parallel>], iteration_bounds = array<i64: 1>, scalar_prefetch = 0 : i64, scratch_operands = 0 : i64, tpu.core_type = #tpu.core_type<tc>, window_params = [{transform_indices = @transform_0, window_bounds = array<i64: 16, 128>}, {transform_indices = @transform_1, window_bounds = array<i64: 16, 128>}]} {
    %c0 = arith.constant 0 : index
    %c0_0 = arith.constant 0 : index
    %0 = vector.load %arg1[%c0, %c0_0] : memref<16x128xf32, #tpu.memory_space<vmem>>, vector<16x128xf32>
    %cst = arith.constant dense<0x7F800000> : vector<16xf32>
    %1 = vector.multi_reduction <minimumf>, %0, %cst [1] : vector<16x128xf32> to vector<16xf32>
    %2 = vector.shape_cast %1 : vector<16xf32> to vector<16x1xf32>
    %cst_1 = arith.constant dense<0xFF800000> : vector<16xf32>
    %3 = vector.multi_reduction <maximumf>, %0, %cst_1 [1] : vector<16x128xf32> to vector<16xf32>
    %4 = vector.shape_cast %3 : vector<16xf32> to vector<16x1xf32>
    %5 = arith.subf %4, %2 : vector<16x1xf32>
    %cst_2 = arith.constant 1.500000e+01 : f32
    %6 = vector.broadcast %cst_2 : f32 to vector<16x1xf32>
    %7 = arith.divf %5, %6 : vector<16x1xf32>
    %cst_3 = arith.constant 9.99999996E-13 : f32
    %8 = vector.broadcast %cst_3 : f32 to vector<16x1xf32>
    %9 = arith.maximumf %7, %8 : vector<16x1xf32>
    %10 = tpu.reciprocal %9 : vector<16x1xf32> -> vector<16x1xf32>
    %11 = vector.broadcast %10 : vector<16x1xf32> to vector<16x128xf32>
    %12 = arith.mulf %0, %11 : vector<16x128xf32>
    %cst_4 = arith.constant -8.000000e+00 : f32
    %cst_5 = arith.constant 7.000000e+00 : f32
    %13 = vector.broadcast %cst_4 : f32 to vector<16x128xf32>
    %14 = arith.maximumf %13, %12 : vector<16x128xf32>
    %15 = vector.broadcast %cst_5 : f32 to vector<16x128xf32>
    %16 = arith.minimumf %15, %14 : vector<16x128xf32>
    %17 = math.roundeven %16 : vector<16x128xf32>
    %18 = vector.broadcast %7 : vector<16x1xf32> to vector<16x128xf32>
    %19 = arith.mulf %17, %18 : vector<16x128xf32>
    %c0_6 = arith.constant 0 : index
    %c0_7 = arith.constant 0 : index
    %20 = vector.load %arg2[%c0_6, %c0_7] : memref<16x128xf32, #tpu.memory_space<vmem>>, vector<16x128xf32>
    tpu.vector_store %arg2[%c0_6, %c0_7], %19 {strides = array<i32>} : memref<16x128xf32, #tpu.memory_space<vmem>>, vector<16x128xf32>,
    return
  }
  func.func @transform_0(%arg0: i32) -> (i32, i32) {
    %c0_i32 = arith.constant 0 : i32
    %c0_i32_0 = arith.constant 0 : i32
    return %arg0, %c0_i32 : i32, i32
  }
  func.func @transform_1(%arg0: i32) -> (i32, i32) {
    %c0_i32 = arith.constant 0 : i32
    %c0_i32_0 = arith.constant 0 : i32
    return %arg0, %c0_i32 : i32, i32
  }
}

</mosaic_0001>

<bundles_post_ra>
// kernel: tpu_custom_call.1
= control target key start
LH: loop header
LB: loop body
LE: loop exit
PB: predicated region body
PF: predicated region fallthrough
CT: control target
= control target key end

     0   :  { %6 = vsyncpa [#allocation3], 0  ;;  %s165_s0 = inlined_call_operand.hbm [shape: f32[16,128], index: 0, kind: input, shape index: {}]   ;;  %s166_s1 = inlined_call_operand.hbm [shape: f32[16,128], index: 1, kind: output, shape index: {}]  }
   0x1   :  { %7 = vsyncpa [#allocation4], 0  ;;  %s139_s6 = smov [#allocation2]  }
   0x2   :  { %s13_s7 = sshll.u32 %s139_s6, 4  ;;  %s14_s7 = int_to_ptr.vmem [resolvable:$true] %s13_s7 }
   0x3   :  { %s103_s8 = scalar_lea.vmem %s14_s7, 256  ;;  %p108_p1 = scmp.lt.s32.totalorder %s14_s7, %s14_s7 }
   0x4   :  { %p104_p0 = scmp.ne.s32.totalorder %s14_s7, %s103_s8  ;;  %p109_p2 = scmp.lt.s32.totalorder %s103_s8, %s103_s8 }
   0x6   :  { %p110_p3 = por %p109_p2, %p108_p1 }
   0x8   :  { %p111_p4 = pnand %p110_p3, %p104_p0 }
   0xa   :  { %114 = shalt.err (!%p111_p4)
}
   0xb   :  { %s140_s9 = smov 128   ;;  %s141_s10 = smov 8  }
   0xc   :  { %19 = dma.hbm_to_vmem [thread:$0]  %s165_s0, 256, %s14_s7, [#allocation3], %s140_s9, %s140_s9, %s141_s10  }
   0xd   :  { %135 = dma.done.wait [#allocation3], 256  }
   0xe   :  { %136 = vsyncadd [#allocation3], 4294967040  ;;  %v23_v0 = vld [vmem:[#allocation2] sm:$0xff]  ;;  %v24_v1 = vld [vmem:[#allocation2 + $0x8] sm:$0xff]  ;;  %s142_s0 = smov [#allocation5]  }
   0xf   :  { %29 = vmax.xlane.f32.xlu1 %v23_v0  ;;  %25 = vmin.xlane.f32.xlu0 %v23_v0  ;;  %s59_s13 = sshll.u32 %s142_s0, 4  ;;  %s60_s13 = int_to_ptr.vmem [resolvable:$true] %s59_s13 }
  0x10   :  { %s115_s14 = scalar_lea.vmem %s60_s13, 256  ;;  %p120_p6 = scmp.lt.s32.totalorder %s60_s13, %s60_s13 }
  0x11   :  { %p116_p5 = scmp.ne.s32.totalorder %s60_s13, %s115_s14  ;;  %p121_p7 = scmp.lt.s32.totalorder %s115_s14, %s115_s14 }
  0x13   :  { %31 = vmax.xlane.f32.xlu1 %v24_v1  ;;  %27 = vmin.xlane.f32.xlu0 %v24_v1  ;;  %p122_p8 = por %p121_p7, %p120_p6 }
  0x15   :  { %p123_p9 = pnand %p122_p8, %p116_p5 }
  0x98   :  { %v30_v2 = vpop.xlane.xlu1 %29  ;;  %v26_v3 = vpop.xlane.xlu0 %25 }
  0x99   :  { %v33_v4 = vsub.f32 %v30_v2, %v26_v3 }
  0x9b   :  { %v36_v5 = vmul.f32 0.06666667, %v33_v4 }
  0x9c   :  { %v32_v6 = vpop.xlane.xlu1 %31  ;;  %v28_v7 = vpop.xlane.xlu0 %27 }
  0x9d   :  { %v38_v8 = vmax.f32 %v36_v5, 1e-12  ;;  %v34_v9 = vsub.f32 %v32_v6, %v28_v7 }
  0x9f   :  { %91 = vrcp.f32 %v38_v8  ;;  %v37_v10 = vmul.f32 0.06666667, %v34_v9 }
  0xa1   :  { %v39_v11 = vmax.f32 %v37_v10, 1e-12 }
  0xa3   :  { %93 = vrcp.f32 %v39_v11 }
  0xac   :  { %v92_v12 = vpop.eup %91 }
  0xad   :  { %v42_v13 = vmul.f32 %v92_v12, %v23_v0 }
  0xaf   :  { %v44_v14 = vmax.f32 %v42_v13, -8.0 }
  0xb0   :  { %v94_v15 = vpop.eup %93 }
  0xb1   :  { %v46_v16 = vmin.f32 %v44_v14, 7.0  ;;  %v43_v17 = vmul.f32 %v94_v15, %v24_v1 }
  0xb3   :  { %v73_v18 = vcvt.f32.s32 %v46_v16  ;;  %v45_v19 = vmax.f32 %v43_v17, -8.0  ;;  %v71_v22 = vand.u32 2147483647, %v46_v16  ;;  %v76_v24 = vand.u32 2147483648, %v46_v16 }
  0xb5   :  { %v74_v20 = vcvt.s32.f32 %v73_v18  ;;  %v47_v21 = vmin.f32 %v45_v19, 7.0  ;;  %vm72_vm0 = vcmp.lt.f32.partialorder %v71_v22, 8388608.0 }
  0xb7   :  { %v75_v23 = vand.u32 2147483647, %v74_v20  ;;  %v81_v25 = vcvt.f32.s32 %v47_v21  ;;  %v79_v28 = vand.u32 2147483647, %v47_v21  ;;  %v84_v31 = vand.u32 2147483648, %v47_v21 }
  0xb9   :  { %v77_v26 = vor.u32 %v76_v24, %v75_v23  ;;  %v82_v27 = vcvt.s32.f32 %v81_v25  ;;  %vm80_vm1 = vcmp.lt.f32.partialorder %v79_v28, 8388608.0 }
  0xbb   :  { %v78_v29 = vsel %vm72_vm0, %v77_v26, %v46_v16  ;;  %v83_v30 = vand.u32 2147483647, %v82_v27 }
  0xbc   :  { %v50_v32 = vmul.f32 %v78_v29, %v36_v5 }
  0xbd   :  { %v85_v33 = vor.u32 %v84_v31, %v83_v30 }
  0xbe   :  { %52 = vst [vmem:[#allocation5] sm:$0xff] %v50_v32 }
  0xbf   :  { %v86_v34 = vsel %vm80_vm1, %v85_v33, %v47_v21 }
  0xc0   :  { %v51_v35 = vmul.f32 %v86_v34, %v37_v10 }
  0xc2   :  { %53 = vst [vmem:[#allocation5 + $0x8] sm:$0xff] %v51_v35 }
  0xc3   :  { %126 = shalt.err (!%p123_p9)
}
  0xc4   :  { %65 = dma.vmem_to_hbm [thread:$0]  %s60_s13, 256, %s166_s1, [#allocation4], %s140_s9, %s140_s9, %s141_s10  }
  0xc5   :  { %137 = dma.done.wait [#allocation4], 256  }
  0xc6   :  { %138 = vsyncadd [#allocation4], 4294967040 }
  0xc7   :  { %69 = vsyncpa [#allocation3], 1 }
  0xc8   :  { %70 = vsyncpa [#allocation4], 1 }

</bundles_post_ra>
